<compile_context>
chip_gen: v5e
topology: v5e:2x2
jax: 0.10.0
libtpu: 0.0.40
codegen_flags: <defaults>
</compile_context>

<pallas_src>
import functools

import jax
import jax.numpy as jnp
from jax import lax
from jax.experimental import pallas as pl
from jax.experimental.pallas import tpu as pltpu

# ----------------------------- problem sizes ------------------------------
N, C_IN, H, W = 2, 4, 16, 16      # input (NCHW on the PyTorch side)
C_OUT = 8                         # conv output channels
K_CLS = 10                        # classifier classes
KH = KW = 3                       # conv kernel
STEPS = 2                         # cfg.OPTIM.STEPS

KCOL = KH * KW * C_IN             # 36 valid im2col columns
BIAS_COL = KCOL                   # column 36 carries a constant 1.0 (conv bias)
K_PACK = 40                       # 36 data + 1 ones + 3 zero pad (sublane multiple of 8)
PAD_C = 128                       # padded conv channel dim  (C_OUT=8  -> 128)
BIAS_LANE = C_OUT                 # padded channel lane 8 carries the fc-bias "1.0"
PAD_CLS = 128                     # padded class dim         (K_CLS=10 -> 128)


# ------------------------------ Pallas kernel -----------------------------
def _tta_model_kernel(col_ref, wc_ref, wf_ref, out_ref, *, n, hw, steps):
    """All TTA steps of the model forward in one launch.

    col_ref: (n*hw, K_PACK)   im2col of the padded NHWC input; col 36 == 1.0
    wc_ref : (K_PACK, PAD_C)  conv weight matrix; row 36 = conv bias, [36,8]=1.0
    wf_ref : (PAD_C, PAD_CLS) fc weight matrix;  row 8  = fc bias
    out_ref: (n, PAD_CLS)     logits (padded; valid classes are [:, :K_CLS])
    """
    col = col_ref[...]
    wc = wc_ref[...]
    wf = wf_ref[...]
    inv_hw = 1.0 / float(hw)

    def one_step(_, carry):
        # TODO(synk): forward_and_adapt loss + optimizer update (Adam/SGD) are
        # abstract in TTA_BASE; parameters stay fixed, so each step repeats
        # the same forward pass (matching the reference loop semantics).
        del carry
        # Conv as one MXU matmul; conv bias rides the ones column of `col`.
        conv = jnp.dot(col, wc, preferred_element_type=jnp.float32)   # (n*hw, PAD_C)
        conv = jnp.maximum(conv, 0.0)                                 # ReLU
        # Global average pool: single reshape + XLU reduction (no concat relayout).
        pooled = conv.reshape(n, hw, PAD_C).sum(axis=1) * inv_hw      # (n, PAD_C)
        # FC head; fc bias rides pooled lane BIAS_LANE (exactly 1.0 after GAP).
        return jnp.dot(pooled, wf, preferred_element_type=jnp.float32)

    init = jnp.zeros((n, PAD_CLS), jnp.float32)
    logits = lax.fori_loop(0, steps, one_step, init, unroll=True)
    out_ref[...] = logits.astype(out_ref.dtype)


def _model_forward(col, wc_mat, wf_p, *, steps):
    """All TTA steps as a single gridless pallas_call (whole arrays in VMEM)."""
    n = col.shape[0] // (H * W)
    kernel = functools.partial(_tta_model_kernel, n=n, hw=H * W, steps=steps)
    flops = steps * (2 * col.shape[0] * K_PACK * PAD_C + 2 * n * PAD_C * PAD_CLS)
    bytes_accessed = 4 * (col.size + wc_mat.size + wf_p.size + n * PAD_CLS)
    vmem = functools.partial(pl.BlockSpec, memory_space=pltpu.MemorySpace.VMEM)
    # TODO(synk): if the batch ever grows beyond toy size, tile the (n*hw) row
    # axis as a "parallel" grid axis (blocks of ~2048x128), set vmem_limit_bytes,
    # and cast matmul operands to bf16 — unnecessary at this latency-bound size.
    return pl.pallas_call(
        kernel,
        out_shape=jax.ShapeDtypeStruct((n, PAD_CLS), jnp.float32),
        in_specs=[vmem(), vmem(), vmem()],
        out_specs=vmem(),
        cost_estimate=pl.CostEstimate(
            flops=flops, transcendentals=0, bytes_accessed=bytes_accessed),
    )(col, wc_mat, wf_p)


# -------------------------- wrapper-side packing ---------------------------
def _im2col(x_nchw):
    """NCHW -> zero-padded NHWC -> (N*H*W, K_PACK) im2col matrix (+ ones col)."""
    n = x_nchw.shape[0]
    x = jnp.transpose(x_nchw, (0, 2, 3, 1))                      # NHWC
    xp = jnp.pad(x, ((0, 0), (1, 1), (1, 1), (0, 0)))            # SAME padding
    taps = [xp[:, ky:ky + H, kx:kx + W, :]
            for ky in range(KH) for kx in range(KW)]             # each (N,H,W,Cin)
    col = jnp.concatenate(taps, axis=-1).reshape(n * H * W, KCOL)
    ones = jnp.ones((n * H * W, 1), jnp.float32)                 # bias carrier
    zpad = jnp.zeros((n * H * W, K_PACK - KCOL - 1), jnp.float32)
    return jnp.concatenate([col, ones, zpad], axis=-1)           # (N*H*W, K_PACK)


def _pack_params(wc, bc, wf, bf):
    """Pack weights into zero-padded matrices with biases folded in."""
    wc_mat = jnp.zeros((K_PACK, PAD_C), jnp.float32)
    wc_mat = wc_mat.at[:KCOL, :C_OUT].set(wc.reshape(KCOL, C_OUT))
    wc_mat = wc_mat.at[BIAS_COL, :C_OUT].set(bc.reshape(C_OUT))   # conv bias
    wc_mat = wc_mat.at[BIAS_COL, BIAS_LANE].set(1.0)              # fc-bias carrier
    wf_p = jnp.zeros((PAD_C, PAD_CLS), jnp.float32)
    wf_p = wf_p.at[:C_OUT, :K_CLS].set(wf)
    wf_p = wf_p.at[BIAS_LANE, :K_CLS].set(bf.reshape(K_CLS))      # fc bias
    return wc_mat, wf_p


def _tta_forward(x_nchw, wc, bc, wf, bf, *, steps):
    """TTA_BASE.forward: run forward_and_adapt `steps` times, return last outputs."""
    col = _im2col(x_nchw)                       # loop-invariant: hoisted
    wc_mat, wf_p = _pack_params(wc, bc, wf, bf)  # loop-invariant: hoisted
    out_padded = _model_forward(col, wc_mat, wf_p, steps=steps)
    return out_padded[:, :K_CLS]


# ------------------------------ TTA_BASE port -----------------------------
class TTABasePallas:
    """JAX/Pallas port of TTA_BASE with a minimal conv classifier as `model`."""

    def __init__(self, steps=STEPS, seed=0):
        self.steps = steps
        key = jax.random.PRNGKey(seed)
        k1, k2, k3, k4 = jax.random.split(key, 4)
        self.conv_w = (jax.random.normal(k1, (KH, KW, C_IN, C_OUT), jnp.float32)
                       * 0.1)
        self.conv_b = jax.random.normal(k2, (1, C_OUT), jnp.float32) * 0.1
        self.fc_w = jax.random.normal(k3, (C_OUT, K_CLS), jnp.float32) * 0.1
        self.fc_b = jax.random.normal(k4, (1, K_CLS), jnp.float32) * 0.1
        # collect_params equivalent (all params "require grad" here).
        self.params = {
            "conv.weight": self.conv_w, "conv.bias": self.conv_b,
            "fc.weight": self.fc_w, "fc.bias": self.fc_b,
        }
        # TODO(synk): setup_optimizer (Adam/SGD state) — no adaptation loss is
        # defined in the base class, so no optimizer step is performed.
        self._forward_jit = jax.jit(
            functools.partial(_tta_forward, steps=self.steps))

    def forward(self, x_nchw):
        return self._forward_jit(x_nchw, self.conv_w, self.conv_b,
                                 self.fc_w, self.fc_b)


# --------------------------- reference (pure JAX) --------------------------
def _reference_forward(x_nchw, wc, bc, wf, bf):
    x = jnp.transpose(x_nchw, (0, 2, 3, 1))
    y = jax.lax.conv_general_dilated(
        x, wc, window_strides=(1, 1), padding="SAME",
        dimension_numbers=("NHWC", "HWIO", "NHWC"))
    y = jnp.maximum(y + bc.reshape(1, 1, 1, C_OUT), 0.0)
    pooled = jnp.mean(y, axis=(1, 2))               # (N, Cout)
    return pooled @ wf + bf                         # (N, K)


# --------------------------------- main ------------------------------------
if __name__ == "__main__":
    key = jax.random.PRNGKey(0)
    x = jax.random.normal(key, (N, C_IN, H, W), jnp.float32)  # NCHW like torch

    tta = TTABasePallas(steps=STEPS, seed=0)
    out = tta.forward(x)
    out = jax.block_until_ready(out)

    ref = _reference_forward(x, tta.conv_w, tta.conv_b, tta.fc_w, tta.fc_b)
    assert out.shape == (N, K_CLS), out.shape
    assert jnp.allclose(out, ref, atol=1e-4, rtol=1e-4), (
        float(jnp.max(jnp.abs(out - ref))))

    print("KERNEL_OK")
</pallas_src>

<mosaic_0001>
module attributes {stable_mosaic.version = 11 : i64} {
  func.func @_tta_model_kernel(%arg0: memref<512x40xf32, #tpu.memory_space<vmem>>, %arg1: memref<40x128xf32, #tpu.memory_space<vmem>>, %arg2: memref<128x128xf32, #tpu.memory_space<vmem>>, %arg3: memref<2x128xf32, #tpu.memory_space<vmem>>) attributes {dimension_semantics = [], scalar_prefetch = 0 : i64, scratch_operands = 0 : i64, tpu.core_type = #tpu.core_type<tc>} {
    %c0 = arith.constant 0 : index
    %c0_0 = arith.constant 0 : index
    %0 = vector.load %arg0[%c0, %c0_0] : memref<512x40xf32, #tpu.memory_space<vmem>>, vector<512x40xf32>
    %c0_1 = arith.constant 0 : index
    %c0_2 = arith.constant 0 : index
    %1 = vector.load %arg1[%c0_1, %c0_2] : memref<40x128xf32, #tpu.memory_space<vmem>>, vector<40x128xf32>
    %c0_3 = arith.constant 0 : index
    %c0_4 = arith.constant 0 : index
    %2 = vector.load %arg2[%c0_3, %c0_4] : memref<128x128xf32, #tpu.memory_space<vmem>>, vector<128x128xf32>
    %cst = arith.constant 0.000000e+00 : f32
    %3 = vector.broadcast %cst : f32 to vector<2x128xf32>
    %c0_i32 = arith.constant 0 : i32
    %cst_5 = arith.constant dense<0.000000e+00> : vector<512x128xf32>
    %4 = tpu.matmul %0, %1, %cst_5 {dimension_numbers = #tpu.dot_dimension_numbers<[1], [0], [0], [1], [0, 0, 1, 1], [], []>} : vector<512x40xf32>, vector<40x128xf32>, vector<512x128xf32> -> vector<512x128xf32>
    %cst_6 = arith.constant 0.000000e+00 : f32
    %5 = vector.broadcast %cst_6 : f32 to vector<512x128xf32>
    %6 = arith.maximumf %4, %5 : vector<512x128xf32>
    %7 = vector.shape_cast %6 : vector<512x128xf32> to vector<2x256x128xf32>
    %cst_7 = arith.constant dense<0.000000e+00> : vector<2x128xf32>
    %8 = vector.multi_reduction <add>, %7, %cst_7 [1] : vector<2x256x128xf32> to vector<2x128xf32>
    %cst_8 = arith.constant 3.906250e-03 : f32
    %9 = vector.broadcast %cst_8 : f32 to vector<2x128xf32>
    %10 = arith.mulf %8, %9 : vector<2x128xf32>
    %cst_9 = arith.constant dense<0.000000e+00> : vector<2x128xf32>
    %11 = tpu.matmul %10, %2, %cst_9 {dimension_numbers = #tpu.dot_dimension_numbers<[1], [0], [0], [1], [0, 0, 1, 1], [], []>} : vector<2x128xf32>, vector<128x128xf32>, vector<2x128xf32> -> vector<2x128xf32>
    %c1_i32 = arith.constant 1 : i32
    %cst_10 = arith.constant dense<0.000000e+00> : vector<512x128xf32>
    %12 = tpu.matmul %0, %1, %cst_10 {dimension_numbers = #tpu.dot_dimension_numbers<[1], [0], [0], [1], [0, 0, 1, 1], [], []>} : vector<512x40xf32>, vector<40x128xf32>, vector<512x128xf32> -> vector<512x128xf32>
    %cst_11 = arith.constant 0.000000e+00 : f32
    %13 = vector.broadcast %cst_11 : f32 to vector<512x128xf32>
    %14 = arith.maximumf %12, %13 : vector<512x128xf32>
    %15 = vector.shape_cast %14 : vector<512x128xf32> to vector<2x256x128xf32>
    %cst_12 = arith.constant dense<0.000000e+00> : vector<2x128xf32>
    %16 = vector.multi_reduction <add>, %15, %cst_12 [1] : vector<2x256x128xf32> to vector<2x128xf32>
    %cst_13 = arith.constant 3.906250e-03 : f32
    %17 = vector.broadcast %cst_13 : f32 to vector<2x128xf32>
    %18 = arith.mulf %16, %17 : vector<2x128xf32>
    %cst_14 = arith.constant dense<0.000000e+00> : vector<2x128xf32>
    %19 = tpu.matmul %18, %2, %cst_14 {dimension_numbers = #tpu.dot_dimension_numbers<[1], [0], [0], [1], [0, 0, 1, 1], [], []>} : vector<2x128xf32>, vector<128x128xf32>, vector<2x128xf32> -> vector<2x128xf32>
    %c0_15 = arith.constant 0 : index
    %c0_16 = arith.constant 0 : index
    %20 = vector.load %arg3[%c0_15, %c0_16] : memref<2x128xf32, #tpu.memory_space<vmem>>, vector<2x128xf32>
    tpu.vector_store %arg3[%c0_15, %c0_16], %19 {strides = array<i32>} : memref<2x128xf32, #tpu.memory_space<vmem>>, vector<2x128xf32>,
    return
  }
}

</mosaic_0001>

<bundles_post_ra>
// kernel: _tta_forward.1
= control target key start
LH: loop header
LB: loop body
LE: loop exit
PB: predicated region body
PF: predicated region fallthrough
CT: control target
= control target key end

     0   :  { %s1214_s0 = inlined_call_operand.vmem [shape: f32[512,40], index: 0, kind: input, shape index: {}]   ;;  %s1215_s1 = inlined_call_operand.vmem [shape: f32[40,128], index: 1, kind: input, shape index: {}]   ;;  %s1216_s2 = inlined_call_operand.vmem [shape: f32[128,128], index: 2, kind: input, shape index: {}]   ;;  %s1217_s3 = inlined_call_operand.hbm [shape: f32[2,128], index: 3, kind: output, shape index: {}]  }
   0x1   :  { %v83_v0 = vld [vmem:[%s1215_s1 + $0x20] sm:$0xff]  ;;  %v82_v1 = vld [vmem:[%s1215_s1 + $0x18] sm:$0xff]  ;;  %v81_v2 = vld [vmem:[%s1215_s1 + $0x10] sm:$0xff] }
   0x2   :  { %304 = vmatpush.msra.mxu0 %v83_v0  ;;  %749 = vmatpush.msra.mxu2 %v83_v0  ;;  %v80_v3 = vld [vmem:[%s1215_s1 + $0x8] sm:$0xff] }
   0x3   :  { %750 = vmatpush.msra.mxu3 %v83_v0  ;;  %748 = vmatpush.msra.mxu1 %v83_v0 }
   0x4   :  { %305 = vmatpush.msra.mxu0 %v82_v1  ;;  %752 = vmatpush.msra.mxu2 %v82_v1 }
   0x5   :  { %753 = vmatpush.msra.mxu3 %v82_v1  ;;  %751 = vmatpush.msra.mxu1 %v82_v1 }
   0x6   :  { %8 = vsyncpa [#allocation3], 0  ;;  %306 = vmatpush.msra.mxu0 %v81_v2  ;;  %755 = vmatpush.msra.mxu2 %v81_v2  ;;  %v79_v4 = vld [vmem:[%s1215_s1] sm:$0xff]  ;;  %vm100_vm0 = vcmask 326656   ;;  %v45_v6 = vld [vmem:[%s1214_s0 + $0xf0] sm:$0xff]  ;;  %vm644_vm1 = vcmask 1041409  }
   0x7   :  { %756 = vmatpush.msra.mxu3 %v81_v2  ;;  %754 = vmatpush.msra.mxu1 %v81_v2  ;;  %v15_v5 = vld [vmem:[%s1214_s0] sm:$0xff]  ;;  %v62_v7 = vld [vmem:[%s1214_s0 + $0x178] sm:$0xff]  ;;  %v16_v8 = vld [vmem:[%s1214_s0 + $0x8] sm:$0xff]  ;;  %s675_s15 = sshll.u32 %s1217_s3, 4  ;;  %s676_s15 = int_to_ptr.hbm [resolvable:$true] %s675_s15 }
   0x8   :  { %307 = vmatpush.msra.mxu0 %v80_v3  ;;  %758 = vmatpush.msra.mxu2 %v80_v3  ;;  %v46_v9 = vld [vmem:[%s1214_s0 + $0xf8] sm:$0xff]  ;;  %v63_v10 = vld [vmem:[%s1214_s0 + $0x180] sm:$0xff]  ;;  %v17_v11 = vld [vmem:[%s1214_s0 + $0x10] sm:$0xff] }
   0x9   :  { %759 = vmatpush.msra.mxu3 %v80_v3  ;;  %757 = vmatpush.msra.mxu1 %v80_v3  ;;  %v47_v12 = vld [vmem:[%s1214_s0 + $0x100] sm:$0xff]  ;;  %v64_v13 = vld [vmem:[%s1214_s0 + $0x188] sm:$0xff]  ;;  %v18_v14 = vld [vmem:[%s1214_s0 + $0x18] sm:$0xff] }
   0xa   :  { %308 = vmatpush.msra.mxu0 %v79_v4  ;;  %761 = vmatpush.msra.mxu2 %v79_v4  ;;  %v48_v15 = vld [vmem:[%s1214_s0 + $0x108] sm:$0xff]  ;;  %v65_v17 = vld [vmem:[%s1214_s0 + $0x190] sm:$0xff]  ;;  %v19_v18 = vld [vmem:[%s1214_s0 + $0x20] sm:$0xff] }
   0xb   :  { %684 = vmatmul.msk.f32.vlgmr.msra.gmra.mxu0 %vm100_vm0, %v15_v5  ;;  %714 = vmatmul.msk.f32.vlgmr.msra.gmra.mxu2 %vm100_vm0, %v45_v6  ;;  %v32_v16 = vld [vmem:[%s1214_s0 + $0x88] sm:$0xff]  ;;  %v49_v19 = vld [vmem:[%s1214_s0 + $0x110] sm:$0xff]  ;;  %v66_v21 = vld [vmem:[%s1214_s0 + $0x198] sm:$0xff] }
   0xc   :  { %762 = vmatpush.msra.mxu3 %v79_v4  ;;  %760 = vmatpush.msra.mxu1 %v79_v4  ;;  %v33_v20 = vld [vmem:[%s1214_s0 + $0x90] sm:$0xff]  ;;  %v20_v22 = vld [vmem:[%s1214_s0 + $0x28] sm:$0xff]  ;;  %v50_v23 = vld [vmem:[%s1214_s0 + $0x118] sm:$0xff] }
   0xd   :  { %731 = vmatmul.msk.f32.vlgmr.msra.gmra.mxu3 %vm100_vm0, %v62_v7  ;;  %701 = vmatmul.msk.f32.vlgmr.msra.gmra.mxu1 %vm100_vm0, %v32_v16  ;;  %v34_v24 = vld [vmem:[%s1214_s0 + $0x98] sm:$0xff]  ;;  %v67_v25 = vld [vmem:[%s1214_s0 + $0x1a0] sm:$0xff]  ;;  %v21_v26 = vld [vmem:[%s1214_s0 + $0x30] sm:$0xff] }
   0xe   :  { %v51_v27 = vld [vmem:[%s1214_s0 + $0x120] sm:$0xff]  ;;  %v68_v29 = vld [vmem:[%s1214_s0 + $0x1a8] sm:$0xff]  ;;  %v22_v30 = vld [vmem:[%s1214_s0 + $0x38] sm:$0xff] }
   0xf   :  { %v35_v28 = vld [vmem:[%s1214_s0 + $0xa0] sm:$0xff]  ;;  %v52_v31 = vld [vmem:[%s1214_s0 + $0x128] sm:$0xff]  ;;  %v69_v33 = vld [vmem:[%s1214_s0 + $0x1b0] sm:$0xff] }
  0x10   :  { %v36_v32 = vld [vmem:[%s1214_s0 + $0xa8] sm:$0xff]  ;;  %v23_v34 = vld [vmem:[%s1214_s0 + $0x40] sm:$0xff]  ;;  %v53_v35 = vld [vmem:[%s1214_s0 + $0x130] sm:$0xff] }
  0x11   :  { %v37_v36 = vld [vmem:[%s1214_s0 + $0xb0] sm:$0xff]  ;;  %v70_v37 = vld [vmem:[%s1214_s0 + $0x1b8] sm:$0xff]  ;;  %v24_v38 = vld [vmem:[%s1214_s0 + $0x48] sm:$0xff] }
  0x12   :  { %v54_v39 = vld [vmem:[%s1214_s0 + $0x138] sm:$0xff]  ;;  %v71_v41 = vld [vmem:[%s1214_s0 + $0x1c0] sm:$0xff]  ;;  %v25_v42 = vld [vmem:[%s1214_s0 + $0x50] sm:$0xff] }
  0x13   :  { %685 = vmatmul.msk.f32.gmra.mxu0 %vm100_vm0, %v16_v8  ;;  %715 = vmatmul.msk.f32.gmra.mxu2 %vm100_vm0, %v46_v9  ;;  %v38_v40 = vld [vmem:[%s1214_s0 + $0xb8] sm:$0xff]  ;;  %v55_v43 = vld [vmem:[%s1214_s0 + $0x140] sm:$0xff]  ;;  %v72_v45 = vld [vmem:[%s1214_s0 + $0x1c8] sm:$0xff] }
  0x14   :  { %v39_v44 = vld [vmem:[%s1214_s0 + $0xc0] sm:$0xff]  ;;  %v26_v46 = vld [vmem:[%s1214_s0 + $0x58] sm:$0xff]  ;;  %v56_v47 = vld [vmem:[%s1214_s0 + $0x148] sm:$0xff] }
  0x15   :  { %732 = vmatmul.msk.f32.gmra.mxu3 %vm100_vm0, %v63_v10  ;;  %702 = vmatmul.msk.f32.gmra.mxu1 %vm100_vm0, %v33_v20  ;;  %v40_v48 = vld [vmem:[%s1214_s0 + $0xc8] sm:$0xff]  ;;  %v73_v49 = vld [vmem:[%s1214_s0 + $0x1d0] sm:$0xff]  ;;  %v27_v50 = vld [vmem:[%s1214_s0 + $0x60] sm:$0xff] }
  0x16   :  { %v57_v51 = vld [vmem:[%s1214_s0 + $0x150] sm:$0xff]  ;;  %v74_v53 = vld [vmem:[%s1214_s0 + $0x1d8] sm:$0xff]  ;;  %v28_v54 = vld [vmem:[%s1214_s0 + $0x68] sm:$0xff] }
  0x17   :  { %v41_v52 = vld [vmem:[%s1214_s0 + $0xd0] sm:$0xff]  ;;  %v58_v55 = vld [vmem:[%s1214_s0 + $0x158] sm:$0xff]  ;;  %v75_v57 = vld [vmem:[%s1214_s0 + $0x1e0] sm:$0xff] }
  0x18   :  { %v42_v56 = vld [vmem:[%s1214_s0 + $0xd8] sm:$0xff]  ;;  %v29_v58 = vld [vmem:[%s1214_s0 + $0x70] sm:$0xff]  ;;  %v59_v59 = vld [vmem:[%s1214_s0 + $0x160] sm:$0xff] }
  0x19   :  { %v43_v60 = vld [vmem:[%s1214_s0 + $0xe0] sm:$0xff]  ;;  %v76_v61 = vld [vmem:[%s1214_s0 + $0x1e8] sm:$0xff]  ;;  %v30_v62 = vld [vmem:[%s1214_s0 + $0x78] sm:$0xff] }
  0x1a   :  { %v60_v63 = vld [vmem:[%s1214_s0 + $0x168] sm:$0xff]  ;;  %v77_v1 = vld [vmem:[%s1214_s0 + $0x1f0] sm:$0xff]  ;;  %v31_v3 = vld [vmem:[%s1214_s0 + $0x80] sm:$0xff] }
  0x1b   :  { %686 = vmatmul.msk.f32.gmra.mxu0 %vm100_vm0, %v17_v11  ;;  %716 = vmatmul.msk.f32.gmra.mxu2 %vm100_vm0, %v47_v12  ;;  %v44_v0 = vld [vmem:[%s1214_s0 + $0xe8] sm:$0xff]  ;;  %v61_v4 = vld [vmem:[%s1214_s0 + $0x170] sm:$0xff]  ;;  %v78_v5 = vld [vmem:[%s1214_s0 + $0x1f8] sm:$0xff] }
  0x1d   :  { %733 = vmatmul.msk.f32.gmra.mxu3 %vm100_vm0, %v64_v13  ;;  %703 = vmatmul.msk.f32.gmra.mxu1 %vm100_vm0, %v34_v24 }
  0x23   :  { %687 = vmatmul.msk.f32.gmra.mxu0 %vm100_vm0, %v18_v14  ;;  %717 = vmatmul.msk.f32.gmra.mxu2 %vm100_vm0, %v48_v15 }
  0x25   :  { %734 = vmatmul.msk.f32.gmra.mxu3 %vm100_vm0, %v65_v17  ;;  %704 = vmatmul.msk.f32.gmra.mxu1 %vm100_vm0, %v35_v28 }
  0x2b   :  { %688 = vmatmul.msk.f32.gmra.mxu0 %vm100_vm0, %v19_v18  ;;  %718 = vmatmul.msk.f32.gmra.mxu2 %vm100_vm0, %v49_v19 }
  0x2d   :  { %735 = vmatmul.msk.f32.gmra.mxu3 %vm100_vm0, %v66_v21  ;;  %705 = vmatmul.msk.f32.gmra.mxu1 %vm100_vm0, %v36_v32 }
  0x33   :  { %689 = vmatmul.msk.f32.gmra.mxu0 %vm100_vm0, %v20_v22  ;;  %719 = vmatmul.msk.f32.gmra.mxu2 %vm100_vm0, %v50_v23 }
  0x35   :  { %736 = vmatmul.msk.f32.gmra.mxu3 %vm100_vm0, %v67_v25  ;;  %706 = vmatmul.msk.f32.gmra.mxu1 %vm100_vm0, %v37_v36 }
  0x3b   :  { %690 = vmatmul.msk.f32.gmra.mxu0 %vm100_vm0, %v21_v26  ;;  %720 = vmatmul.msk.f32.gmra.mxu2 %vm100_vm0, %v51_v27 }
  0x3d   :  { %737 = vmatmul.msk.f32.gmra.mxu3 %vm100_vm0, %v68_v29  ;;  %707 = vmatmul.msk.f32.gmra.mxu1 %vm100_vm0, %v38_v40 }
  0x43   :  { %691 = vmatmul.msk.f32.gmra.mxu0 %vm100_vm0, %v22_v30  ;;  %721 = vmatmul.msk.f32.gmra.mxu2 %vm100_vm0, %v52_v31 }
  0x45   :  { %738 = vmatmul.msk.f32.gmra.mxu3 %vm100_vm0, %v69_v33  ;;  %708 = vmatmul.msk.f32.gmra.mxu1 %vm100_vm0, %v39_v44  ;;  %v99_v44 = vld [vmem:[%s1216_s2 + $0x78] sm:$0xff] }
  0x46   :  { %647 = vmatpush.msrb.mxu1 %v99_v44 }
  0x4b   :  { %692 = vmatmul.msk.f32.gmra.mxu0 %vm100_vm0, %v23_v34  ;;  %722 = vmatmul.msk.f32.gmra.mxu2 %vm100_vm0, %v53_v35 }
  0x4d   :  { %739 = vmatmul.msk.f32.gmra.mxu3 %vm100_vm0, %v70_v37  ;;  %709 = vmatmul.msk.f32.gmra.mxu1 %vm100_vm0, %v40_v48  ;;  %v98_v48 = vld [vmem:[%s1216_s2 + $0x70] sm:$0xff] }
  0x4e   :  { %648 = vmatpush.msrb.mxu1 %v98_v48 }
  0x53   :  { %693 = vmatmul.msk.f32.gmra.mxu0 %vm100_vm0, %v24_v38  ;;  %723 = vmatmul.msk.f32.gmra.mxu2 %vm100_vm0, %v54_v39 }
  0x55   :  { %740 = vmatmul.msk.f32.gmra.mxu3 %vm100_vm0, %v71_v41  ;;  %710 = vmatmul.msk.f32.gmra.mxu1 %vm100_vm0, %v41_v52 }
  0x5b   :  { %694 = vmatmul.msk.f32.gmra.mxu0 %vm100_vm0, %v25_v42  ;;  %724 = vmatmul.msk.f32.gmra.mxu2 %vm100_vm0, %v55_v43 }
  0x5d   :  { %741 = vmatmul.msk.f32.gmra.mxu3 %vm100_vm0, %v72_v45  ;;  %711 = vmatmul.msk.f32.gmra.mxu1 %vm100_vm0, %v42_v56 }
  0x63   :  { %695 = vmatmul.msk.f32.gmra.mxu0 %vm100_vm0, %v26_v46  ;;  %725 = vmatmul.msk.f32.gmra.mxu2 %vm100_vm0, %v56_v47 }
  0x65   :  { %742 = vmatmul.msk.f32.gmra.mxu3 %vm100_vm0, %v73_v49  ;;  %712 = vmatmul.msk.f32.gmra.mxu1 %vm100_vm0, %v43_v60 }
  0x6b   :  { %696 = vmatmul.msk.f32.gmra.mxu0 %vm100_vm0, %v27_v50  ;;  %726 = vmatmul.msk.f32.gmra.mxu2 %vm100_vm0, %v57_v51 }
  0x6d   :  { %743 = vmatmul.msk.f32.gmra.mxu3 %vm100_vm0, %v74_v53  ;;  %713 = vmatmul.msk.f32.gmra.mxu1 %vm100_vm0, %v44_v0  ;;  %v97_v53 = vld [vmem:[%s1216_s2 + $0x68] sm:$0xff] }
  0x6e   :  { %649 = vmatpush.msrb.mxu1 %v97_v53 }
  0x73   :  { %697 = vmatmul.msk.f32.gmra.mxu0 %vm100_vm0, %v28_v54  ;;  %727 = vmatmul.msk.f32.gmra.mxu2 %vm100_vm0, %v58_v55 }
  0x75   :  { %744 = vmatmul.msk.f32.gmra.mxu3 %vm100_vm0, %v75_v57 }
  0x7b   :  { %698 = vmatmul.msk.f32.gmra.mxu0 %vm100_vm0, %v29_v58  ;;  %728 = vmatmul.msk.f32.gmra.mxu2 %vm100_vm0, %v59_v59  ;;  %v96_v58 = vld [vmem:[%s1216_s2 + $0x60] sm:$0xff] }
  0x7c   :  { %650 = vmatpush.msrb.mxu1 %v96_v58 }
  0x7d   :  { %745 = vmatmul.msk.f32.gmra.mxu3 %vm100_vm0, %v76_v61 }
  0x83   :  { %699 = vmatmul.msk.f32.gmra.mxu0 %vm100_vm0, %v30_v62  ;;  %729 = vmatmul.msk.f32.gmra.mxu2 %vm100_vm0, %v60_v63  ;;  %v95_v62 = vld [vmem:[%s1216_s2 + $0x58] sm:$0xff]  ;;  %v94_v63 = vld [vmem:[%s1216_s2 + $0x50] sm:$0xff] }
  0x84   :  { %651 = vmatpush.msrb.mxu1 %v95_v62 }
  0x85   :  { %746 = vmatmul.msk.f32.gmra.mxu3 %vm100_vm0, %v77_v1 }
  0x86   :  { %652 = vmatpush.msrb.mxu1 %v94_v63 }
  0x88   :  { %v310_v2 = vpop.f32.mrf.mxu0 }
  0x89   :  { %v502_v7 = vmax.f32 %v310_v2, 0.0 }
  0x8a   :  { %v1092_v23 = vpop.f32.mrf.mxu1 }
  0x8b   :  { %700 = vmatmul.msk.f32.gmra.mxu0 %vm100_vm0, %v31_v3  ;;  %730 = vmatmul.msk.f32.gmra.mxu2 %vm100_vm0, %v61_v4  ;;  %v93_v4 = vld [vmem:[%s1216_s2 + $0x48] sm:$0xff] }
  0x8c   :  { %653 = vmatpush.msrb.mxu1 %v93_v4 }
  0x8d   :  { %747 = vmatmul.msk.f32.gmra.mxu3 %vm100_vm0, %v78_v5 }
  0x8e   :  { %v1082_v6 = vpop.f32.mrf.mxu2 }
  0x90   :  { %v313_v8 = vpop.f32.mrf.mxu0  ;;  %v1084_v9 = vpop.f32.mrf.mxu3 }
  0x91   :  { %v503_v10 = vmax.f32 %v313_v8, 0.0 }
  0x92   :  { %v1096_v34 = vpop.f32.mrf.mxu1 }
  0x93   :  { %v566_v11 = vadd.f32 %v503_v10, %v502_v7 }
  0x96   :  { %v1086_v12 = vpop.f32.mrf.mxu2 }
  0x98   :  { %v316_v13 = vpop.f32.mrf.mxu0  ;;  %v1088_v14 = vpop.f32.mrf.mxu3 }
  0x99   :  { %v504_v15 = vmax.f32 %v316_v13, 0.0 }
  0x9a   :  { %v1100_v43 = vpop.f32.mrf.mxu1 }
  0x9b   :  { %v567_v16 = vadd.f32 %v566_v11, %v504_v15 }
  0x9e   :  { %v406_v17 = vpop.f32.mrf.mxu2 }
  0x9f   :  { %v534_v24 = vmax.f32 %v406_v17, 0.0 }
  0xa0   :  { %v319_v18 = vpop.f32.mrf.mxu0  ;;  %v1090_v19 = vpop.f32.mrf.mxu3 }
  0xa1   :  { %v505_v20 = vmax.f32 %v319_v18, 0.0 }
  0xa2   :  { %v1110_v49 = vpop.f32.mrf.mxu1 }
  0xa3   :  { %v568_v21 = vadd.f32 %v567_v16, %v505_v20 }
  0xa6   :  { %v409_v22 = vpop.f32.mrf.mxu2 }
  0xa7   :  { %v535_v25 = vmax.f32 %v409_v22, 0.0 }
  0xa8   :  { %v322_v26 = vpop.f32.mrf.mxu0  ;;  %v1094_v29 = vpop.f32.mrf.mxu3 }
  0xa9   :  { %v603_v27 = vadd.f32 %v535_v25, %v534_v24  ;;  %v506_v28 = vmax.f32 %v322_v26, 0.0 }
  0xaa   :  { %v1117_v55 = vpop.f32.mrf.mxu1 }
  0xab   :  { %v569_v30 = vadd.f32 %v568_v21, %v506_v28 }
  0xae   :  { %v412_v31 = vpop.f32.mrf.mxu2 }
  0xaf   :  { %v536_v32 = vmax.f32 %v412_v31, 0.0 }
  0xb0   :  { %v325_v33 = vpop.f32.mrf.mxu0  ;;  %v1098_v38 = vpop.f32.mrf.mxu3 }
  0xb1   :  { %v604_v35 = vadd.f32 %v603_v27, %v536_v32  ;;  %v507_v36 = vmax.f32 %v325_v33, 0.0 }
  0xb2   :  { %v1124_v61 = vpop.f32.mrf.mxu1 }
  0xb3   :  { %v570_v37 = vadd.f32 %v569_v30, %v507_v36 }
  0xb6   :  { %v415_v39 = vpop.f32.mrf.mxu2 }
  0xb7   :  { %v537_v40 = vmax.f32 %v415_v39, 0.0 }
  0xb8   :  { %v328_v41 = vpop.f32.mrf.mxu0  ;;  %v1105_v46 = vpop.f32.mrf.mxu3 }
  0xb9   :  { %v605_v42 = vadd.f32 %v604_v35, %v537_v40  ;;  %v508_v16 = vmax.f32 %v328_v41, 0.0 }
  0xba   :  { %v1134_v3 = vpop.f32.mrf.mxu1 }
  0xbb   :  { %v571_v21 = vadd.f32 %v570_v37, %v508_v16  ;;  %v92_v37 = vld [vmem:[%s1216_s2 + $0x40] sm:$0xff] }
  0xbc   :  { %654 = vmatpush.msrb.mxu1 %v92_v37  ;;  %v88_v37 = vld [vmem:[%s1216_s2 + $0x20] sm:$0xff] }
  0xbe   :  { %v418_v45 = vpop.f32.mrf.mxu2 }
  0xbf   :  { %v538_v25 = vmax.f32 %v418_v45, 0.0 }
  0xc0   :  { %v331_v47 = vpop.f32.mrf.mxu0  ;;  %v1112_v52 = vpop.f32.mrf.mxu3 }
  0xc1   :  { %v509_v17 = vmax.f32 %v331_v47, 0.0  ;;  %v606_v33 = vadd.f32 %v605_v42, %v538_v25 }
  0xc2   :  { %v1141_v10 = vpop.f32.mrf.mxu1 }
  0xc3   :  { %v572_v26 = vadd.f32 %v571_v21, %v509_v17 }
  0xc6   :  { %v421_v50 = vpop.f32.mrf.mxu2 }
  0xc7   :  { %v539_v30 = vmax.f32 %v421_v50, 0.0 }
  0xc8   :  { %v334_v51 = vpop.f32.mrf.mxu0  ;;  %v1119_v57 = vpop.f32.mrf.mxu3 }
  0xc9   :  { %v510_v22 = vmax.f32 %v334_v51, 0.0  ;;  %v607_v41 = vadd.f32 %v606_v33, %v539_v30  ;;  %v520_v33 = vmax.f32 %v1096_v34, 0.0  ;;  %v549_v34 = vmax.f32 %v1084_v9, 0.0 }
  0xca   :  { %v1145_v20 = vpop.f32.mrf.mxu1  ;;  %v524_v9 = vmax.f32 %v1124_v61, 0.0 }
  0xcb   :  { %v573_v31 = vadd.f32 %v572_v26, %v510_v22 }
  0xce   :  { %v424_v54 = vpop.f32.mrf.mxu2 }
  0xcf   :  { %v540_v35 = vmax.f32 %v424_v54, 0.0 }
  0xd0   :  { %v337_v56 = vpop.f32.mrf.mxu0  ;;  %v1132_v0 = vpop.f32.mrf.mxu3 }
  0xd1   :  { %v511_v27 = vmax.f32 %v337_v56, 0.0  ;;  %v608_v50 = vadd.f32 %v607_v41, %v540_v35  ;;  %v521_v41 = vmax.f32 %v1100_v43, 0.0  ;;  %v550_v43 = vmax.f32 %v1088_v14, 0.0 }
  0xd2   :  { %v1152_v51 = vpop.f32.mrf.mxu1  ;;  %v553_v14 = vmax.f32 %v1098_v38, 0.0  ;;  %v86_v38 = vld [vmem:[%s1216_s2 + $0x10] sm:$0xff] }
  0xd3   :  { %v574_v36 = vadd.f32 %v573_v31, %v511_v27 }
  0xd6   :  { %v427_v59 = vpop.f32.mrf.mxu2 }
  0xd7   :  { %v541_v44 = vmax.f32 %v427_v59, 0.0 }
  0xd8   :  { %v340_v60 = vpop.f32.mrf.mxu0  ;;  %v1139_v7 = vpop.f32.mrf.mxu3 }
  0xd9   :  { %v512_v32 = vmax.f32 %v340_v60, 0.0  ;;  %v609_v54 = vadd.f32 %v608_v50, %v541_v44 }
  0xdb   :  { %v575_v47 = vadd.f32 %v574_v36, %v512_v32 }
  0xde   :  { %v430_v1 = vpop.f32.mrf.mxu2 }
  0xdf   :  { %v542_v53 = vmax.f32 %v430_v1, 0.0 }
  0xe0   :  { %v343_v2 = vpop.f32.mrf.mxu0  ;;  %v1143_v15 = vpop.f32.mrf.mxu3 }
  0xe1   :  { %v513_v39 = vmax.f32 %v343_v2, 0.0  ;;  %v610_v59 = vadd.f32 %v609_v54, %v542_v53 }
  0xe3   :  { %v576_v56 = vadd.f32 %v575_v47, %v513_v39 }
  0xe6   :  { %v433_v5 = vpop.f32.mrf.mxu2 }
  0xe7   :  { %v543_v58 = vmax.f32 %v433_v5, 0.0  ;;  %v519_v5 = vmax.f32 %v1092_v23, 0.0  ;;  %v89_v23 = vld [vmem:[%s1216_s2 + $0x28] sm:$0xff] }
  0xe8   :  { %v346_v8 = vpop.f32.mrf.mxu0  ;;  %v1147_v28 = vpop.f32.mrf.mxu3 }
  0xe9   :  { %v514_v48 = vmax.f32 %v346_v8, 0.0  ;;  %v611_v17 = vadd.f32 %v610_v59, %v543_v58 }
  0xeb   :  { %v577_v60 = vadd.f32 %v576_v56, %v514_v48  ;;  %v87_v56 = vld [vmem:[%s1216_s2 + $0x18] sm:$0xff] }
  0xee   :  { %v436_v11 = vpop.f32.mrf.mxu2 }
  0xef   :  { %v544_v2 = vmax.f32 %v436_v11, 0.0  ;;  %v91_v11 = vld [vmem:[%s1216_s2 + $0x38] sm:$0xff] }
  0xf0   :  { %v349_v13 = vpop.f32.mrf.mxu0  ;;  %v1154_v63 = vpop.f32.mrf.mxu3  ;;  %655 = vmatpush.msrb.mxu1 %v91_v11 }
  0xf1   :  { %v515_v42 = vmax.f32 %v349_v13, 0.0  ;;  %v612_v26 = vadd.f32 %v611_v17, %v544_v2  ;;  %v1156_v13 = vpop.f32.mrf.mxu1  ;;  %v552_v2 = vmax.f32 %v1094_v29, 0.0  ;;  %v528_v29 = vmax.f32 %v1152_v51, 0.0  ;;  %v84_v51 = vld [vmem:[%s1216_s2] sm:$0xff] }
  0xf3   :  { %v578_v4 = vadd.f32 %v577_v60, %v515_v42  ;;  %v523_v42 = vmax.f32 %v1117_v55, 0.0  ;;  %v526_v55 = vmax.f32 %v1141_v10, 0.0  ;;  %v85_v10 = vld [vmem:[%s1216_s2 + $0x8] sm:$0xff] }
  0xf6   :  { %v439_v18 = vpop.f32.mrf.mxu2 }
  0xf7   :  { %v545_v21 = vmax.f32 %v439_v18, 0.0  ;;  %v90_v18 = vld [vmem:[%s1216_s2 + $0x30] sm:$0xff]  ;;  %s790_s2 = smov [#allocation2]  }
  0xf8   :  { %v352_v24 = vpop.f32.mrf.mxu0  ;;  %656 = vmatpush.msrb.mxu1 %v90_v18  ;;  %s673_s12 = sshll.u32 %s790_s2, 4  ;;  %s674_s12 = int_to_ptr.vmem [resolvable:$true] %s673_s12 }
  0xf9   :  { %v516_v62 = vmax.f32 %v352_v24, 0.0  ;;  %v613_v24 = vadd.f32 %v612_v26, %v545_v21  ;;  %v394_v60 = vpop.f32.mrf.mxu1 }
  0xfa   :  { %657 = vmatpush.msrb.mxu1 %v89_v23  ;;  %v532_v23 = vmax.f32 %v1082_v6, 0.0 }
  0xfb   :  { %v579_v22 = vadd.f32 %v578_v4, %v516_v62  ;;  %v551_v62 = vmax.f32 %v1090_v19, 0.0  ;;  %v525_v4 = vmax.f32 %v1134_v3, 0.0  ;;  %v527_v19 = vmax.f32 %v1145_v20, 0.0 }
  0xfc   :  { %658 = vmatpush.msrb.mxu1 %v88_v37  ;;  %v561_v37 = vmax.f32 %v1154_v63, 0.0 }
  0xfe   :  { %v442_v40 = vpop.f32.mrf.mxu2  ;;  %659 = vmatpush.msrb.mxu1 %v87_v56 }
  0xff   :  { %v546_v27 = vmax.f32 %v442_v40, 0.0  ;;  %v1169_v40 = vpop.f32.mrf.mxu3 }
 0x100   :  { %v355_v45 = vpop.f32.mrf.mxu0  ;;  %660 = vmatpush.msrb.mxu1 %v86_v38 }
 0x101   :  { %v517_v8 = vmax.f32 %v355_v45, 0.0  ;;  %v614_v35 = vadd.f32 %v613_v24, %v546_v27  ;;  %v522_v45 = vmax.f32 %v1110_v49, 0.0  ;;  %v555_v27 = vmax.f32 %v1112_v52, 0.0 }
 0x102   :  { %v529_v52 = vmax.f32 %v1156_v13, 0.0  ;;  %v530_v24 = vmax.f32 %v394_v60, 0.0  ;;  %661 = vmatpush.msrb.mxu1 %v85_v10  ;;  %v559_v13 = vmax.f32 %v1143_v15, 0.0 }
 0x103   :  { %v580_v1 = vadd.f32 %v579_v22, %v517_v8 }
 0x104   :  { %662 = vmatpush.msrb.mxu1 %v84_v51 }
 0x106   :  { %v445_v16 = vpop.f32.mrf.mxu2 }
 0x107   :  { %v547_v31 = vmax.f32 %v445_v16, 0.0  ;;  %v493_v17 = vpop.f32.mrf.mxu3 }
 0x108   :  { %v358_v25 = vpop.f32.mrf.mxu0 }
 0x109   :  { %v518_v30 = vmax.f32 %v358_v25, 0.0  ;;  %v615_v44 = vadd.f32 %v614_v35, %v547_v31  ;;  %v554_v25 = vmax.f32 %v1105_v46, 0.0  ;;  %v556_v46 = vmax.f32 %v1119_v57, 0.0 }
 0x10a   :  { %v557_v31 = vmax.f32 %v1132_v0, 0.0  ;;  %v558_v57 = vmax.f32 %v1139_v7, 0.0  ;;  %v562_v7 = vmax.f32 %v1169_v40, 0.0 }
 0x10b   :  { %v581_v32 = vadd.f32 %v580_v1, %v518_v30  ;;  %v397_v30 = vpop.f32.mrf.mxu1 }
 0x10c   :  { %v531_v18 = vmax.f32 %v397_v30, 0.0 }
 0x10d   :  { %v582_v36 = vadd.f32 %v581_v32, %v519_v5 }
 0x10e   :  { %v448_v39 = vpop.f32.mrf.mxu2 }
 0x10f   :  { %v583_v47 = vadd.f32 %v582_v36, %v520_v33  ;;  %v548_v48 = vmax.f32 %v448_v39, 0.0  ;;  %v496_v33 = vpop.f32.mrf.mxu3 }
 0x111   :  { %v584_v50 = vadd.f32 %v583_v47, %v521_v41  ;;  %v616_v53 = vadd.f32 %v615_v44, %v548_v48  ;;  %v533_v44 = vmax.f32 %v1086_v12, 0.0  ;;  %v560_v47 = vmax.f32 %v1147_v28, 0.0 }
 0x113   :  { %v585_v54 = vadd.f32 %v584_v50, %v522_v45  ;;  %v617_v58 = vadd.f32 %v616_v53, %v549_v34 }
 0x115   :  { %v586_v49 = vadd.f32 %v585_v54, %v523_v42  ;;  %v618_v59 = vadd.f32 %v617_v58, %v550_v43  ;;  %v563_v43 = vmax.f32 %v493_v17, 0.0  ;;  %v564_v54 = vmax.f32 %v496_v33, 0.0 }
 0x117   :  { %v587_v8 = vadd.f32 %v586_v49, %v524_v9  ;;  %v619_v16 = vadd.f32 %v618_v59, %v551_v62  ;;  %v499_v56 = vpop.f32.mrf.mxu3 }
 0x118   :  { %v565_v58 = vmax.f32 %v499_v56, 0.0 }
 0x119   :  { %v588_v21 = vadd.f32 %v587_v8, %v525_v4  ;;  %v620_v22 = vadd.f32 %v619_v16, %v552_v2 }
 0x11b   :  { %v589_v61 = vadd.f32 %v588_v21, %v526_v55  ;;  %v621_v26 = vadd.f32 %v620_v22, %v553_v14 }
 0x11d   :  { %v590_v3 = vadd.f32 %v589_v61, %v527_v19  ;;  %v622_v1 = vadd.f32 %v621_v26, %v554_v25 }
 0x11f   :  { %v591_v20 = vadd.f32 %v590_v3, %v528_v29  ;;  %v623_v5 = vadd.f32 %v622_v1, %v555_v27 }
 0x121   :  { %v624_v32 = vadd.f32 %v623_v5, %v556_v46  ;;  %v592_v11 = vadd.f32 %v591_v20, %v529_v52 }
 0x123   :  { %v625_v35 = vadd.f32 %v624_v32, %v557_v31  ;;  %v593_v36 = vadd.f32 %v592_v11, %v530_v24 }
 0x125   :  { %v626_v39 = vadd.f32 %v625_v35, %v558_v57  ;;  %v594_v41 = vadd.f32 %v593_v36, %v531_v18 }
 0x127   :  { %v627_v0 = vadd.f32 %v626_v39, %v559_v13  ;;  %v595_v48 = vadd.f32 %v594_v41, %v532_v23 }
 0x129   :  { %v628_v34 = vadd.f32 %v627_v0, %v560_v47  ;;  %v596_v45 = vadd.f32 %v595_v48, %v533_v44 }
 0x12b   :  { %v629_v50 = vadd.f32 %v628_v34, %v561_v37  ;;  %v597_v53 = vrot.slane %v596_v45, 4 }
 0x12d   :  { %v630_v6 = vadd.f32 %v629_v50, %v562_v7  ;;  %v598_v15 = vadd.f32 %v597_v53, %v596_v45 }
 0x12f   :  { %v631_v42 = vadd.f32 %v630_v6, %v563_v43  ;;  %v599_v12 = vrot.slane %v598_v15, 2 }
 0x131   :  { %v632_v60 = vadd.f32 %v631_v42, %v564_v54  ;;  %v600_v9 = vadd.f32 %v599_v12, %v598_v15 }
 0x133   :  { %v633_v28 = vadd.f32 %v632_v60, %v565_v58  ;;  %v601_v59 = vrot.slane %v600_v9, 1 }
 0x135   :  { %v634_v62 = vrot.slane %v633_v28, 4  ;;  %v602_v8 = vadd.f32 %v601_v59, %v600_v9 }
 0x137   :  { %v635_v49 = vadd.f32 %v634_v62, %v633_v28  ;;  %v640_v16 = vmul.f32 0.00390625, %v602_v8 }
 0x139   :  { %v636_v63 = vrot.slane %v635_v49, 2 }
 0x13b   :  { %v637_v2 = vadd.f32 %v636_v63, %v635_v49 }
 0x13d   :  { %v638_v4 = vrot.slane %v637_v2, 1 }
 0x13f   :  { %v639_v40 = vadd.f32 %v638_v4, %v637_v2 }
 0x141   :  { %v641_v14 = vmul.f32 0.00390625, %v639_v40 }
 0x143   :  { %v645_v17 = vsel %vm644_vm1, %v641_v14, %v640_v16 }
 0x144   :  { %663 = vmatmul.f32.vlgmr.msrb.gmra.mxu1 %v645_v17 }
 0x1c1   :  { %v664_v55 = vpop.f32.mrf.mxu1 }
 0x1c2   :  { %667 = vst [vmem:[#allocation2] sm:$0x3] %v664_v55 }
 0x1c3   :  { %678 = dma.vmem_to_hbm [thread:$0]  %s674_s12, 32, %s676_s15, [#allocation3]  }
 0x1c4   :  { %788 = dma.done.wait [#allocation3], 32  }
 0x1c5   :  { %789 = vsyncadd [#allocation3], 4294967264 }
 0x1c6   :  { %683 = vsyncpa [#allocation3], 1 }

</bundles_post_ra>
